<compile_context>
chip_gen: v6e
topology: v6e:2x2x1
jax: 0.10.0
libtpu: 0.0.40
codegen_flags: <defaults>
</compile_context>

<pallas_src>
import functools

import jax
import jax.numpy as jnp
from jax.experimental import pallas as pl
from jax.experimental.pallas import tpu as pltpu

LANE = 128  # TPU lane width; pad feature dims / N to multiples of this.


# ------------------------------ helpers --------------------------------------
def _round_up(n, m):
    return ((n + m - 1) // m) * m


def _pad2d(x, rows, cols):
    r, c = x.shape
    if r == rows and c == cols:
        return x
    return jnp.pad(x, ((0, rows - r), (0, cols - c)))


def _pick_tile(dim, cap=512, min_blocks=1):
    """Largest of (cap, 256, 128) dividing `dim` with at least `min_blocks` blocks."""
    for t in (cap, 256, 128):
        if dim % t == 0 and dim // t >= min_blocks:
            return t
    return 128


# ----------------------------- Pallas kernel ---------------------------------
def _gcn_layer_kernel(a_ref, xs_ref, dinv_ref, w_ref, b_ref, o_ref, acc_ref):
    """One fused GCN layer row-panel.

    Grid (i, k):
      a_ref    (tm, tk)   exact 0/1 adjacency (incl. self loops), bf16
      xs_ref   (tk, Fin)  dinv-prescaled activations, bf16
      dinv_ref (tm, 1)    row-side D^{-1/2}, f32
      w_ref    (Fin, Fo)  weights, bf16 (resident)
      b_ref    (1, Fo)    bias, f32 (resident)
      o_ref    (tm, Fo)   relu(A_hat @ X @ W + b)
      acc_ref  (tm, Fin)  f32 accumulator for (A+I) @ (dinv*X)
    """
    k = pl.program_id(1)

    @pl.when(k == 0)
    def _():
        acc_ref[...] = jnp.zeros_like(acc_ref)

    # bf16 x bf16 -> f32 accumulation on the MXU (aggregation over neighbours).
    acc_ref[...] += jnp.dot(a_ref[...], xs_ref[...],
                            preferred_element_type=jnp.float32)

    @pl.when(k == pl.num_programs(1) - 1)
    def _():
        agg = acc_ref[...] * dinv_ref[...]                      # row D^{-1/2}
        h = jnp.dot(agg.astype(jnp.bfloat16), w_ref[...],
                    preferred_element_type=jnp.float32)
        h = h + b_ref[...]                                      # bias broadcast
        o_ref[...] = jnp.maximum(h, 0.0).astype(o_ref.dtype)    # lane-dense store


def gcn_layer(a01, xs, dinv_col, w, b, out_dtype):
    """relu( dinv_row * (a01 @ xs) @ w + b ).  All dims pre-padded to 128 multiples
    (except the trailing 1 of dinv_col)."""
    n_pad = a01.shape[0]
    f_in_pad = xs.shape[1]
    f_out_pad = w.shape[1]

    # >= 2 row blocks when possible so the v7x megacore can shard the 'parallel' axis.
    tm = _pick_tile(n_pad, cap=512, min_blocks=2 if n_pad >= 256 else 1)
    tk = _pick_tile(n_pad, cap=512)
    grid = (n_pad // tm, n_pad // tk)

    return pl.pallas_call(
        _gcn_layer_kernel,
        out_shape=jax.ShapeDtypeStruct((n_pad, f_out_pad), out_dtype),
        grid_spec=pltpu.PrefetchScalarGridSpec(
            num_scalar_prefetch=0,
            grid=grid,
            in_specs=[
                pl.BlockSpec((tm, tk), lambda i, k: (i, k)),              # A 0/1
                pl.BlockSpec((tk, f_in_pad), lambda i, k: (k, 0)),        # dinv * X
                pl.BlockSpec((tm, 1), lambda i, k: (i, 0)),               # row dinv
                pl.BlockSpec((f_in_pad, f_out_pad), lambda i, k: (0, 0)),  # W resident
                pl.BlockSpec((1, f_out_pad), lambda i, k: (0, 0)),        # bias resident
            ],
            out_specs=pl.BlockSpec((tm, f_out_pad), lambda i, k: (i, 0)),
            scratch_shapes=[pltpu.VMEM((tm, f_in_pad), jnp.float32)],
        ),
        compiler_params=pltpu.CompilerParams(
            dimension_semantics=("parallel", "arbitrary"),
        ),
    )(a01, xs, dinv_col, w, b)


# ------------------------------- JAX glue -------------------------------------
def build_adjacency(edge_index, num_nodes):
    """Exact 0/1 (A + I) with A[dst, src] = 1, plus D^{-1/2} (in-degree incl. self
    loops), matching PyG gcn_norm with unit edge weights."""
    src = edge_index[0]
    dst = edge_index[1]
    loop = jnp.arange(num_nodes, dtype=edge_index.dtype)
    src = jnp.concatenate([src, loop])
    dst = jnp.concatenate([dst, loop])
    a = jnp.zeros((num_nodes, num_nodes), jnp.float32).at[dst, src].add(1.0)
    a = jnp.minimum(a, 1.0)  # guard duplicate edges -> still 0/1 exact
    deg = jnp.sum(a, axis=1)
    dinv = jnp.where(deg > 0.0, 1.0 / jnp.sqrt(deg), 0.0)
    return a, dinv


def init_encoder_params(h_sizes, key):
    """Glorot-style init per GCNConv layer: W (Fin, Fout), b (1, Fout)."""
    params = []
    for k in range(len(h_sizes) - 1):
        key, wk = jax.random.split(key)
        fan_in, fan_out = h_sizes[k], h_sizes[k + 1]
        scale = jnp.sqrt(6.0 / (fan_in + fan_out))
        w = jax.random.uniform(wk, (fan_in, fan_out), jnp.float32, -scale, scale)
        b = jnp.zeros((1, fan_out), jnp.float32)
        params.append((w, b))
    return params


@functools.partial(jax.jit, static_argnames=())
def encoder_forward(x, edge_index, params):
    """Encoder.forward: x = relu(GCNConv_k(x, edge_index)) per layer (eval mode)."""
    n = x.shape[0]
    n_pad = _round_up(max(n, LANE), LANE)

    # Exact 0/1 adjacency built once; cast to bf16 once (lossless for 0/1).
    a01, dinv = build_adjacency(edge_index, n)
    a01_pad = _pad2d(a01, n_pad, n_pad).astype(jnp.bfloat16)
    dinv_col = jnp.pad(dinv, (0, n_pad - n)).reshape(n_pad, 1)   # f32, zero pad rows

    f_pad0 = _round_up(max(x.shape[1], LANE), LANE)
    x_pad = _pad2d(x.astype(jnp.float32), n_pad, f_pad0)

    num_layers = len(params)
    f_out_last = x.shape[1]
    for li, (w, b) in enumerate(params):
        f_in, f_out = w.shape
        f_in_pad = x_pad.shape[1]
        f_out_pad = _round_up(max(f_out, LANE), LANE)
        w_pad = _pad2d(w, f_in_pad, f_out_pad).astype(jnp.bfloat16)
        b_pad = _pad2d(b, 1, f_out_pad).astype(jnp.float32)

        # Source-side normalization folded into the activations (cheap, fused by XLA).
        xs = (x_pad.astype(jnp.float32) * dinv_col).astype(jnp.bfloat16)

        out_dtype = jnp.float32 if li == num_layers - 1 else jnp.bfloat16
        x_pad = gcn_layer(a01_pad, xs, dinv_col, w_pad, b_pad, out_dtype)
        f_out_last = f_out

    # Padded rows only ever hold relu(bias); padded feature cols are exactly zero.
    return x_pad[:n, :f_out_last]


def encoder_reference(x, edge_index, params):
    """Pure-JAX f32 reference of the PyTorch Encoder forward (eval mode)."""
    n = x.shape[0]
    a01, dinv = build_adjacency(edge_index, n)
    a_hat = dinv[:, None] * a01 * dinv[None, :]
    h = x.astype(jnp.float32)
    for w, b in params:
        h = jnp.maximum(a_hat @ (h @ w) + b, 0.0)
    return h


# --------------------------------- main ----------------------------------------
if __name__ == "__main__":
    key = jax.random.PRNGKey(0)
    k_x, k_p = jax.random.split(key)

    # Small shapes implied by the module: N nodes, feature sizes h_sizes.
    N = 8
    h_sizes = [4, 32, 16]

    x = jax.random.normal(k_x, (N, h_sizes[0]), jnp.float32)

    # Deterministic small directed graph (self-loops added inside build_adjacency).
    src = jnp.array([0, 1, 2, 3, 4, 5, 6, 7, 0, 2, 4, 6], dtype=jnp.int32)
    dst = jnp.array([1, 2, 3, 4, 5, 6, 7, 0, 3, 5, 7, 1], dtype=jnp.int32)
    edge_index = jnp.stack([src, dst], axis=0)  # (2, 12), like PyG edge_index

    params = init_encoder_params(h_sizes, k_p)

    out = encoder_forward(x, edge_index, params)
    out = jax.block_until_ready(out)

    assert out.shape == (N, h_sizes[-1])
    assert bool(jnp.all(out >= 0.0))            # ReLU output
    assert bool(jnp.all(jnp.isfinite(out)))

    # Numerical check against the pure-JAX f32 reference (bf16 matmul tolerance).
    ref = encoder_reference(x, edge_index, params)
    err = float(jnp.max(jnp.abs(out - ref)))
    scale = float(jnp.max(jnp.abs(ref))) + 1.0
    assert err <= 5e-2 * scale, f"max abs err {err} vs scale {scale}"

    print("KERNEL_OK")
</pallas_src>

<mosaic_0001>
module attributes {stable_mosaic.version = 11 : i64} {
  func.func @_gcn_layer_kernel(%arg0: i32, %arg1: i32, %arg2: memref<128x128xbf16, #tpu.memory_space<vmem>>, %arg3: memref<128x128xbf16, #tpu.memory_space<vmem>>, %arg4: memref<128x1xf32, #tpu.memory_space<vmem>>, %arg5: memref<128x128xbf16, #tpu.memory_space<vmem>>, %arg6: memref<1x128xf32, #tpu.memory_space<vmem>>, %arg7: memref<128x128xbf16, #tpu.memory_space<vmem>>, %arg8: memref<128x128xf32, #tpu.memory_space<vmem>>) attributes {dimension_semantics = [#tpu.dimension_semantics<parallel>, #tpu.dimension_semantics<arbitrary>], iteration_bounds = array<i64: 1, 1>, scalar_prefetch = 0 : i64, scratch_operands = 1 : i64, tpu.core_type = #tpu.core_type<tc>, window_params = [{transform_indices = @transform_0, window_bounds = array<i64: 128, 128>}, {transform_indices = @transform_1, window_bounds = array<i64: 128, 128>}, {transform_indices = @transform_2, window_bounds = array<i64: 128, 1>}, {pipeline_mode = #tpu.pipeline_mode<synchronous>, transform_indices = @transform_3, window_bounds = array<i64: 128, 128>}, {pipeline_mode = #tpu.pipeline_mode<synchronous>, transform_indices = @transform_4, window_bounds = array<i64: 1, 128>}, {transform_indices = @transform_5, window_bounds = array<i64: 128, 128>}]} {
    %c0_i32 = arith.constant 0 : i32
    %0 = arith.cmpi eq, %arg1, %c0_i32 : i32
    %1 = arith.extui %0 : i1 to i32
    %c0_i32_0 = arith.constant 0 : i32
    %2 = arith.cmpi ne, %1, %c0_i32_0 : i32
    scf.if %2 {
      %cst_10 = arith.constant 0.000000e+00 : f32
      %12 = vector.broadcast %cst_10 : f32 to vector<128x128xf32>
      %c0_11 = arith.constant 0 : index
      %c0_12 = arith.constant 0 : index
      %13 = vector.load %arg8[%c0_11, %c0_12] : memref<128x128xf32, #tpu.memory_space<vmem>>, vector<128x128xf32>
      tpu.vector_store %arg8[%c0_11, %c0_12], %12 {strides = array<i32>} : memref<128x128xf32, #tpu.memory_space<vmem>>, vector<128x128xf32>,
    } else {
    }
    %c0 = arith.constant 0 : index
    %c0_1 = arith.constant 0 : index
    %3 = vector.load %arg8[%c0, %c0_1] : memref<128x128xf32, #tpu.memory_space<vmem>>, vector<128x128xf32>
    %c0_2 = arith.constant 0 : index
    %c0_3 = arith.constant 0 : index
    %4 = vector.load %arg2[%c0_2, %c0_3] : memref<128x128xbf16, #tpu.memory_space<vmem>>, vector<128x128xbf16>
    %c0_4 = arith.constant 0 : index
    %c0_5 = arith.constant 0 : index
    %5 = vector.load %arg3[%c0_4, %c0_5] : memref<128x128xbf16, #tpu.memory_space<vmem>>, vector<128x128xbf16>
    %cst = arith.constant dense<0.000000e+00> : vector<128x128xf32>
    %6 = tpu.matmul %4, %5, %cst {dimension_numbers = #tpu.dot_dimension_numbers<[1], [0], [0], [1], [0, 0, 1, 1], [], []>} : vector<128x128xbf16>, vector<128x128xbf16>, vector<128x128xf32> -> vector<128x128xf32>
    %7 = arith.addf %3, %6 : vector<128x128xf32>
    %c0_6 = arith.constant 0 : index
    %c0_7 = arith.constant 0 : index
    %8 = vector.load %arg8[%c0_6, %c0_7] : memref<128x128xf32, #tpu.memory_space<vmem>>, vector<128x128xf32>
    tpu.vector_store %arg8[%c0_6, %c0_7], %7 {strides = array<i32>} : memref<128x128xf32, #tpu.memory_space<vmem>>, vector<128x128xf32>,
    %c0_i32_8 = arith.constant 0 : i32
    %9 = arith.cmpi eq, %arg1, %c0_i32_8 : i32
    %10 = arith.extui %9 : i1 to i32
    %c0_i32_9 = arith.constant 0 : i32
    %11 = arith.cmpi ne, %10, %c0_i32_9 : i32
    scf.if %11 {
      %c0_10 = arith.constant 0 : index
      %c0_11 = arith.constant 0 : index
      %12 = vector.load %arg8[%c0_10, %c0_11] : memref<128x128xf32, #tpu.memory_space<vmem>>, vector<128x128xf32>
      %c0_12 = arith.constant 0 : index
      %c0_13 = arith.constant 0 : index
      %13 = vector.load %arg4[%c0_12, %c0_13] : memref<128x1xf32, #tpu.memory_space<vmem>>, vector<128x1xf32>
      %14 = vector.broadcast %13 : vector<128x1xf32> to vector<128x128xf32>
      %15 = arith.mulf %12, %14 : vector<128x128xf32>
      %16 = arith.truncf %15 : vector<128x128xf32> to vector<128x128xbf16>
      %c0_14 = arith.constant 0 : index
      %c0_15 = arith.constant 0 : index
      %17 = vector.load %arg5[%c0_14, %c0_15] : memref<128x128xbf16, #tpu.memory_space<vmem>>, vector<128x128xbf16>
      %cst_16 = arith.constant dense<0.000000e+00> : vector<128x128xf32>
      %18 = tpu.matmul %16, %17, %cst_16 {dimension_numbers = #tpu.dot_dimension_numbers<[1], [0], [0], [1], [0, 0, 1, 1], [], []>} : vector<128x128xbf16>, vector<128x128xbf16>, vector<128x128xf32> -> vector<128x128xf32>
      %c0_17 = arith.constant 0 : index
      %c0_18 = arith.constant 0 : index
      %19 = vector.load %arg6[%c0_17, %c0_18] : memref<1x128xf32, #tpu.memory_space<vmem>>, vector<1x128xf32>
      %20 = vector.broadcast %19 : vector<1x128xf32> to vector<128x128xf32>
      %21 = arith.addf %18, %20 : vector<128x128xf32>
      %cst_19 = arith.constant 0.000000e+00 : f32
      %22 = vector.broadcast %cst_19 : f32 to vector<128x128xf32>
      %23 = arith.maximumf %21, %22 : vector<128x128xf32>
      %24 = arith.truncf %23 : vector<128x128xf32> to vector<128x128xbf16>
      %c0_20 = arith.constant 0 : index
      %c0_21 = arith.constant 0 : index
      %25 = vector.load %arg7[%c0_20, %c0_21] : memref<128x128xbf16, #tpu.memory_space<vmem>>, vector<128x128xbf16>
      tpu.vector_store %arg7[%c0_20, %c0_21], %24 {strides = array<i32>} : memref<128x128xbf16, #tpu.memory_space<vmem>>, vector<128x128xbf16>,
    } else {
    }
    return
  }
  func.func @transform_0(%arg0: i32, %arg1: i32) -> (i32, i32) {
    %c0_i32 = arith.constant 0 : i32
    return %arg0, %arg1 : i32, i32
  }
  func.func @transform_1(%arg0: i32, %arg1: i32) -> (i32, i32) {
    %c0_i32 = arith.constant 0 : i32
    %c0_i32_0 = arith.constant 0 : i32
    return %arg1, %c0_i32 : i32, i32
  }
  func.func @transform_2(%arg0: i32, %arg1: i32) -> (i32, i32) {
    %c0_i32 = arith.constant 0 : i32
    %c0_i32_0 = arith.constant 0 : i32
    return %arg0, %c0_i32 : i32, i32
  }
  func.func @transform_3(%arg0: i32, %arg1: i32) -> (i32, i32) {
    %c0_i32 = arith.constant 0 : i32
    %c0_i32_0 = arith.constant 0 : i32
    %c0_i32_1 = arith.constant 0 : i32
    return %c0_i32, %c0_i32_0 : i32, i32
  }
  func.func @transform_4(%arg0: i32, %arg1: i32) -> (i32, i32) {
    %c0_i32 = arith.constant 0 : i32
    %c0_i32_0 = arith.constant 0 : i32
    %c0_i32_1 = arith.constant 0 : i32
    return %c0_i32, %c0_i32_0 : i32, i32
  }
  func.func @transform_5(%arg0: i32, %arg1: i32) -> (i32, i32) {
    %c0_i32 = arith.constant 0 : i32
    %c0_i32_0 = arith.constant 0 : i32
    return %arg0, %c0_i32 : i32, i32
  }
}

module attributes {stable_mosaic.version = 11 : i64} {
  func.func @_gcn_layer_kernel(%arg0: i32, %arg1: i32, %arg2: memref<128x128xbf16, #tpu.memory_space<vmem>>, %arg3: memref<128x128xbf16, #tpu.memory_space<vmem>>, %arg4: memref<128x1xf32, #tpu.memory_space<vmem>>, %arg5: memref<128x128xbf16, #tpu.memory_space<vmem>>, %arg6: memref<1x128xf32, #tpu.memory_space<vmem>>, %arg7: memref<128x128xf32, #tpu.memory_space<vmem>>, %arg8: memref<128x128xf32, #tpu.memory_space<vmem>>) attributes {dimension_semantics = [#tpu.dimension_semantics<parallel>, #tpu.dimension_semantics<arbitrary>], iteration_bounds = array<i64: 1, 1>, scalar_prefetch = 0 : i64, scratch_operands = 1 : i64, tpu.core_type = #tpu.core_type<tc>, window_params = [{transform_indices = @transform_0, window_bounds = array<i64: 128, 128>}, {transform_indices = @transform_1, window_bounds = array<i64: 128, 128>}, {transform_indices = @transform_2, window_bounds = array<i64: 128, 1>}, {pipeline_mode = #tpu.pipeline_mode<synchronous>, transform_indices = @transform_3, window_bounds = array<i64: 128, 128>}, {pipeline_mode = #tpu.pipeline_mode<synchronous>, transform_indices = @transform_4, window_bounds = array<i64: 1, 128>}, {transform_indices = @transform_5, window_bounds = array<i64: 128, 128>}]} {
    %c0_i32 = arith.constant 0 : i32
    %0 = arith.cmpi eq, %arg1, %c0_i32 : i32
    %1 = arith.extui %0 : i1 to i32
    %c0_i32_0 = arith.constant 0 : i32
    %2 = arith.cmpi ne, %1, %c0_i32_0 : i32
    scf.if %2 {
      %cst_10 = arith.constant 0.000000e+00 : f32
      %12 = vector.broadcast %cst_10 : f32 to vector<128x128xf32>
      %c0_11 = arith.constant 0 : index
      %c0_12 = arith.constant 0 : index
      %13 = vector.load %arg8[%c0_11, %c0_12] : memref<128x128xf32, #tpu.memory_space<vmem>>, vector<128x128xf32>
      tpu.vector_store %arg8[%c0_11, %c0_12], %12 {strides = array<i32>} : memref<128x128xf32, #tpu.memory_space<vmem>>, vector<128x128xf32>,
    } else {
    }
    %c0 = arith.constant 0 : index
    %c0_1 = arith.constant 0 : index
    %3 = vector.load %arg8[%c0, %c0_1] : memref<128x128xf32, #tpu.memory_space<vmem>>, vector<128x128xf32>
    %c0_2 = arith.constant 0 : index
    %c0_3 = arith.constant 0 : index
    %4 = vector.load %arg2[%c0_2, %c0_3] : memref<128x128xbf16, #tpu.memory_space<vmem>>, vector<128x128xbf16>
    %c0_4 = arith.constant 0 : index
    %c0_5 = arith.constant 0 : index
    %5 = vector.load %arg3[%c0_4, %c0_5] : memref<128x128xbf16, #tpu.memory_space<vmem>>, vector<128x128xbf16>
    %cst = arith.constant dense<0.000000e+00> : vector<128x128xf32>
    %6 = tpu.matmul %4, %5, %cst {dimension_numbers = #tpu.dot_dimension_numbers<[1], [0], [0], [1], [0, 0, 1, 1], [], []>} : vector<128x128xbf16>, vector<128x128xbf16>, vector<128x128xf32> -> vector<128x128xf32>
    %7 = arith.addf %3, %6 : vector<128x128xf32>
    %c0_6 = arith.constant 0 : index
    %c0_7 = arith.constant 0 : index
    %8 = vector.load %arg8[%c0_6, %c0_7] : memref<128x128xf32, #tpu.memory_space<vmem>>, vector<128x128xf32>
    tpu.vector_store %arg8[%c0_6, %c0_7], %7 {strides = array<i32>} : memref<128x128xf32, #tpu.memory_space<vmem>>, vector<128x128xf32>,
    %c0_i32_8 = arith.constant 0 : i32
    %9 = arith.cmpi eq, %arg1, %c0_i32_8 : i32
    %10 = arith.extui %9 : i1 to i32
    %c0_i32_9 = arith.constant 0 : i32
    %11 = arith.cmpi ne, %10, %c0_i32_9 : i32
    scf.if %11 {
      %c0_10 = arith.constant 0 : index
      %c0_11 = arith.constant 0 : index
      %12 = vector.load %arg8[%c0_10, %c0_11] : memref<128x128xf32, #tpu.memory_space<vmem>>, vector<128x128xf32>
      %c0_12 = arith.constant 0 : index
      %c0_13 = arith.constant 0 : index
      %13 = vector.load %arg4[%c0_12, %c0_13] : memref<128x1xf32, #tpu.memory_space<vmem>>, vector<128x1xf32>
      %14 = vector.broadcast %13 : vector<128x1xf32> to vector<128x128xf32>
      %15 = arith.mulf %12, %14 : vector<128x128xf32>
      %16 = arith.truncf %15 : vector<128x128xf32> to vector<128x128xbf16>
      %c0_14 = arith.constant 0 : index
      %c0_15 = arith.constant 0 : index
      %17 = vector.load %arg5[%c0_14, %c0_15] : memref<128x128xbf16, #tpu.memory_space<vmem>>, vector<128x128xbf16>
      %cst_16 = arith.constant dense<0.000000e+00> : vector<128x128xf32>
      %18 = tpu.matmul %16, %17, %cst_16 {dimension_numbers = #tpu.dot_dimension_numbers<[1], [0], [0], [1], [0, 0, 1, 1], [], []>} : vector<128x128xbf16>, vector<128x128xbf16>, vector<128x128xf32> -> vector<128x128xf32>
      %c0_17 = arith.constant 0 : index
      %c0_18 = arith.constant 0 : index
      %19 = vector.load %arg6[%c0_17, %c0_18] : memref<1x128xf32, #tpu.memory_space<vmem>>, vector<1x128xf32>
      %20 = vector.broadcast %19 : vector<1x128xf32> to vector<128x128xf32>
      %21 = arith.addf %18, %20 : vector<128x128xf32>
      %cst_19 = arith.constant 0.000000e+00 : f32
      %22 = vector.broadcast %cst_19 : f32 to vector<128x128xf32>
      %23 = arith.maximumf %21, %22 : vector<128x128xf32>
      %c0_20 = arith.constant 0 : index
      %c0_21 = arith.constant 0 : index
      %24 = vector.load %arg7[%c0_20, %c0_21] : memref<128x128xf32, #tpu.memory_space<vmem>>, vector<128x128xf32>
      tpu.vector_store %arg7[%c0_20, %c0_21], %23 {strides = array<i32>} : memref<128x128xf32, #tpu.memory_space<vmem>>, vector<128x128xf32>,
    } else {
    }
    return
  }
  func.func @transform_0(%arg0: i32, %arg1: i32) -> (i32, i32) {
    %c0_i32 = arith.constant 0 : i32
    return %arg0, %arg1 : i32, i32
  }
  func.func @transform_1(%arg0: i32, %arg1: i32) -> (i32, i32) {
    %c0_i32 = arith.constant 0 : i32
    %c0_i32_0 = arith.constant 0 : i32
    return %arg1, %c0_i32 : i32, i32
  }
  func.func @transform_2(%arg0: i32, %arg1: i32) -> (i32, i32) {
    %c0_i32 = arith.constant 0 : i32
    %c0_i32_0 = arith.constant 0 : i32
    return %arg0, %c0_i32 : i32, i32
  }
  func.func @transform_3(%arg0: i32, %arg1: i32) -> (i32, i32) {
    %c0_i32 = arith.constant 0 : i32
    %c0_i32_0 = arith.constant 0 : i32
    %c0_i32_1 = arith.constant 0 : i32
    return %c0_i32, %c0_i32_0 : i32, i32
  }
  func.func @transform_4(%arg0: i32, %arg1: i32) -> (i32, i32) {
    %c0_i32 = arith.constant 0 : i32
    %c0_i32_0 = arith.constant 0 : i32
    %c0_i32_1 = arith.constant 0 : i32
    return %c0_i32, %c0_i32_0 : i32, i32
  }
  func.func @transform_5(%arg0: i32, %arg1: i32) -> (i32, i32) {
    %c0_i32 = arith.constant 0 : i32
    %c0_i32_0 = arith.constant 0 : i32
    return %arg0, %c0_i32 : i32, i32
  }
}

</mosaic_0001>

<bundles_post_ra>
// kernel: encoder_forward.2
= control target key start
LH: loop header
LB: loop body
LE: loop exit
PB: predicated region body
PF: predicated region fallthrough
CT: control target
= control target key end

     0   :  { %v948_v1 = vmov 0   ;;  %s1126_s1 = inlined_call_operand.vmem [shape: bf16[128,128], index: 1, kind: input, shape index: {}]   ;;  %s1127_s0 = inlined_call_operand.vmem [shape: bf16[128,128], index: 0, kind: input, shape index: {}]   ;;  %s1128_s2 = inlined_call_operand.vmem [shape: f32[128,1], index: 2, kind: input, shape index: {}]   ;;  %s1129_s3 = inlined_call_operand.vmem [shape: bf16[128,128], index: 3, kind: input, shape index: {}]   ;;  %s1130_s4 = inlined_call_operand.vmem [shape: f32[1,128], index: 4, kind: input, shape index: {}]   ;;  %s1131_s5 = inlined_call_operand.vmem [shape: bf16[128,128], index: 5, kind: output, shape index: {}]  }
   0x1   :  { %v924_v0 = vld [vmem:[%s1126_s1 + $0x38] sm:$0xff]   ;;  %922 = vset.pattern.permute.xlu0 %v948_v1  ;;  %923 = vset.pattern.permute.xlu1 %v948_v1  ;;  %v925_v2 = vld [vmem:[%s1126_s1 + $0x30] sm:$0xff]   ;;  %v926_v3 = vld [vmem:[%s1126_s1 + $0x28] sm:$0xff]  }
   0x2   :  { %857 = vmatprep.subr.bf16.mxu0 %v924_v0  ;;  %v927_v4 = vld [vmem:[%s1126_s1 + $0x20] sm:$0xff]   ;;  %v928_v6 = vld [vmem:[%s1126_s1 + $0x18] sm:$0xff]   ;;  %v929_v7 = vld [vmem:[%s1126_s1 + $0x10] sm:$0xff]  }
   0x3   :  { %858 = vmatpush3.bf16.msra.mxu0 %v924_v0  ;;  %v932_v5 = vld [vmem:[%s1127_s0] sm:$0xff]   ;;  %v335_v9 = vld [vmem:[%s1128_s2 + $0x10] sm:$0xff]  ;;  %v334_v10 = vld [vmem:[%s1128_s2 + $0x8] sm:$0xff] }
   0x4   :  { %859 = vmatprep.subr.bf16.mxu0 %v925_v2  ;;  %873 = vmatprep.mubr.bf16.mxu0 %v932_v5  ;;  %v333_v8 = vld [vmem:[%s1128_s2] sm:$0xff]  ;;  %v336_v11 = vld [vmem:[%s1128_s2 + $0x18] sm:$0xff]  ;;  %v930_v12 = vld [vmem:[%s1126_s1 + $0x8] sm:$0xff]  }
   0x5   :  { %351 = vperm.xlu0 %922, %v333_v8   ;;  %361 = vperm.xlu1 %923, %v335_v9   ;;  %v337_v13 = vld [vmem:[%s1128_s2 + $0x20] sm:$0xff]  ;;  %v338_v14 = vld [vmem:[%s1128_s2 + $0x28] sm:$0xff]  ;;  %v940_v16 = vld [vmem:[%s1129_s3 + $0x38] sm:$0xff]  }
   0x6   :  { %v931_v15 = vld [vmem:[%s1126_s1] sm:$0xff]   ;;  %v941_v17 = vld [vmem:[%s1129_s3 + $0x30] sm:$0xff]   ;;  %v340_v19 = vld [vmem:[%s1128_s2 + $0x38] sm:$0xff]  ;;  %889 = vmatprep.subr.bf16.mxu1 %v940_v16 }
   0x7   :  { %860 = vmatpush3.bf16.msra.mxu0 %v925_v2  ;;  %v339_v18 = vld [vmem:[%s1128_s2 + $0x30] sm:$0xff]  ;;  %890 = vmatpush3.bf16.msra.mxu1 %v940_v16  ;;  %v942_v20 = vld [vmem:[%s1129_s3 + $0x28] sm:$0xff]   ;;  %v341_v22 = vld [vmem:[%s1128_s2 + $0x40] sm:$0xff] }
   0x8   :  { %861 = vmatprep.subr.bf16.mxu0 %v926_v3  ;;  %891 = vmatprep.subr.bf16.mxu1 %v941_v17  ;;  %v933_v21 = vld [vmem:[%s1127_s0 + $0x8] sm:$0xff]   ;;  %v934_v24 = vld [vmem:[%s1127_s0 + $0x10] sm:$0xff]   ;;  %v943_v25 = vld [vmem:[%s1129_s3 + $0x20] sm:$0xff]  }
   0x9   :  { %356 = vperm.xlu0 %922, %v334_v10   ;;  %366 = vperm.xlu1 %923, %v336_v11   ;;  %v342_v23 = vld [vmem:[%s1128_s2 + $0x48] sm:$0xff]  ;;  %v343_v26 = vld [vmem:[%s1128_s2 + $0x50] sm:$0xff]  ;;  %v344_v27 = vld [vmem:[%s1128_s2 + $0x58] sm:$0xff] }
   0xa   :  { %v944_v28 = vld [vmem:[%s1129_s3 + $0x18] sm:$0xff]   ;;  %v345_v30 = vld [vmem:[%s1128_s2 + $0x60] sm:$0xff]  ;;  %v346_v31 = vld [vmem:[%s1128_s2 + $0x68] sm:$0xff] }
   0xb   :  { %862 = vmatpush3.bf16.msra.mxu0 %v926_v3  ;;  %892 = vmatpush3.bf16.msra.mxu1 %v941_v17  ;;  %v935_v29 = vld [vmem:[%s1127_s0 + $0x18] sm:$0xff]   ;;  %v936_v32 = vld [vmem:[%s1127_s0 + $0x20] sm:$0xff]   ;;  %v347_v33 = vld [vmem:[%s1128_s2 + $0x70] sm:$0xff] }
   0xc   :  { %863 = vmatprep.subr.bf16.mxu0 %v927_v4  ;;  %893 = vmatprep.subr.bf16.mxu1 %v942_v20  ;;  %v348_v34 = vld [vmem:[%s1128_s2 + $0x78] sm:$0xff]  ;;  %v937_v35 = vld [vmem:[%s1127_s0 + $0x28] sm:$0xff]   ;;  %v938_v36 = vld [vmem:[%s1127_s0 + $0x30] sm:$0xff]  }
   0xd   :  { %371 = vperm.xlu0 %922, %v337_v13   ;;  %376 = vperm.xlu1 %923, %v338_v14   ;;  %v939_v37 = vld [vmem:[%s1127_s0 + $0x38] sm:$0xff]   ;;  %v945_v38 = vld [vmem:[%s1129_s3 + $0x10] sm:$0xff]   ;;  %v946_v39 = vld [vmem:[%s1129_s3 + $0x8] sm:$0xff]  }
   0xe   :  { %v947_v40 = vld [vmem:[%s1129_s3] sm:$0xff]  }
   0xf   :  { %864 = vmatpush3.bf16.msra.mxu0 %v927_v4  ;;  %894 = vmatpush3.bf16.msra.mxu1 %v942_v20 }
  0x10   :  { %865 = vmatprep.subr.bf16.mxu0 %v928_v6  ;;  %895 = vmatprep.subr.bf16.mxu1 %v943_v25 }
  0x11   :  { %381 = vperm.xlu0 %922, %v339_v18   ;;  %386 = vperm.xlu1 %923, %v340_v19  }
  0x13   :  { %866 = vmatpush3.bf16.msra.mxu0 %v928_v6  ;;  %896 = vmatpush3.bf16.msra.mxu1 %v943_v25 }
  0x14   :  { %867 = vmatprep.subr.bf16.mxu0 %v929_v7  ;;  %897 = vmatprep.subr.bf16.mxu1 %v944_v28 }
  0x15   :  { %391 = vperm.xlu0 %922, %v341_v22   ;;  %396 = vperm.xlu1 %923, %v342_v23  }
  0x17   :  { %868 = vmatpush3.bf16.msra.mxu0 %v929_v7  ;;  %898 = vmatpush3.bf16.msra.mxu1 %v944_v28 }
  0x18   :  { %869 = vmatprep.subr.bf16.mxu0 %v930_v12  ;;  %899 = vmatprep.subr.bf16.mxu1 %v945_v38 }
  0x19   :  { %401 = vperm.xlu0 %922, %v343_v26   ;;  %406 = vperm.xlu1 %923, %v344_v27  }
  0x1b   :  { %870 = vmatpush3.bf16.msra.mxu0 %v930_v12  ;;  %900 = vmatpush3.bf16.msra.mxu1 %v945_v38 }
  0x1c   :  { %871 = vmatprep.subr.bf16.mxu0 %v931_v15  ;;  %901 = vmatprep.subr.bf16.mxu1 %v946_v39 }
  0x1d   :  { %411 = vperm.xlu0 %922, %v345_v30   ;;  %416 = vperm.xlu1 %923, %v346_v31  }
  0x1f   :  { %872 = vmatpush3.bf16.msra.mxu0 %v931_v15  ;;  %902 = vmatpush3.bf16.msra.mxu1 %v946_v39 }
  0x20   :  { %903 = vmatprep.subr.bf16.mxu1 %v947_v40 }
  0x21   :  { %421 = vperm.xlu0 %922, %v347_v33   ;;  %426 = vperm.xlu1 %923, %v348_v34   ;;  %v737_v34 = vld [vmem:[%s1130_s4] ss:$0 sm:$0xff] }
  0x22   :  { %874 = vmatmul.mubr.bf16.vlgmr.msra.gmra.mxu0 %v933_v21 }
  0x23   :  { %877 = vmatprep.mubr.bf16.mxu0 %v934_v24  ;;  %904 = vmatpush3.bf16.msra.mxu1 %v947_v40 }
  0x2a   :  { %878 = vmatmul.mubr.bf16.gmra.mxu0 %v935_v29 }
  0x2b   :  { %881 = vmatprep.mubr.bf16.mxu0 %v936_v32 }
  0x32   :  { %882 = vmatmul.mubr.bf16.gmra.mxu0 %v937_v35 }
  0x33   :  { %885 = vmatprep.mubr.bf16.mxu0 %v938_v36 }
  0x3a   :  { %886 = vmatmul.mubr.bf16.gmra.mxu0 %v939_v37 }
  0x80   :  { %v362_v41 = vpop.permute.xlu1 %361  ;;  %v352_v42 = vpop.permute.xlu0 %351 }
  0x84   :  { %v367_v43 = vpop.permute.xlu1 %366  ;;  %v357_v44 = vpop.permute.xlu0 %356 }
  0x88   :  { %v377_v45 = vpop.permute.xlu1 %376  ;;  %v372_v47 = vpop.permute.xlu0 %371 }
  0x8c   :  { %v387_v50 = vpop.permute.xlu1 %386  ;;  %v382_v53 = vpop.permute.xlu0 %381 }
  0x90   :  { %v397_v61 = vpop.permute.xlu1 %396  ;;  %v392_v63 = vpop.permute.xlu0 %391 }
  0x94   :  { %v407_v6 = vpop.permute.xlu1 %406  ;;  %v402_v10 = vpop.permute.xlu0 %401 }
  0x98   :  { %v417_v14 = vpop.permute.xlu1 %416  ;;  %v412_v19 = vpop.permute.xlu0 %411 }
  0x9c   :  { %v427_v24 = vpop.permute.xlu1 %426  ;;  %v422_v27 = vpop.permute.xlu0 %421 }
  0xe2   :  { %v875_v46 = vpop.f32.mrf.mxu0 }
  0xe3   :  { %v431_v56 = vmul.f32 %v875_v46, %v362_v41 }
  0xe4   :  { %v219_v48 = vpop.f32.mrf.mxu0 }
  0xe5   :  { %v429_v54 = vmul.f32 %v352_v42, %v219_v48 }
  0xe6   :  { %v876_v49 = vpop.f32.mrf.mxu0 }
  0xe7   :  { %v432_v51 = vmul.f32 %v876_v49, %v367_v43 }
  0xe8   :  { %v222_v52 = vpop.f32.mrf.mxu0 }
  0xe9   :  { %v430_v55 = vmul.f32 %v357_v44, %v222_v52  ;;  %v446_v59 = vpack.c.bf16 %v432_v51, %v431_v56 }
  0xea   :  { %v879_v57 = vpop.f32.mrf.mxu0 }
  0xeb   :  { %v445_v58 = vpack.c.bf16 %v430_v55, %v429_v54  ;;  %v435_v4 = vmul.f32 %v879_v57, %v382_v53 }
  0xec   :  { %v235_v60 = vpop.f32.mrf.mxu0 }
  0xed   :  { %905 = vmatprep.mubr.bf16.mxu1 %v445_v58  ;;  %v433_v2 = vmul.f32 %v372_v47, %v235_v60 }
  0xee   :  { %v880_v62 = vpop.f32.mrf.mxu0  ;;  %906 = vmatmul.mubr.bf16.vlgmr.msra.gmra.mxu1 %v446_v59 }
  0xef   :  { %v436_v0 = vmul.f32 %v880_v62, %v387_v50 }
  0xf0   :  { %v238_v1 = vpop.f32.mrf.mxu0 }
  0xf1   :  { %v434_v3 = vmul.f32 %v377_v45, %v238_v1  ;;  %v448_v8 = vpack.c.bf16 %v436_v0, %v435_v4 }
  0xf2   :  { %v883_v5 = vpop.f32.mrf.mxu0 }
  0xf3   :  { %v447_v7 = vpack.c.bf16 %v434_v3, %v433_v2  ;;  %v439_v17 = vmul.f32 %v883_v5, %v402_v10 }
  0xf4   :  { %v251_v9 = vpop.f32.mrf.mxu0 }
  0xf5   :  { %909 = vmatprep.mubr.bf16.mxu1 %v447_v7  ;;  %v437_v15 = vmul.f32 %v392_v63, %v251_v9 }
  0xf6   :  { %v884_v11 = vpop.f32.mrf.mxu0  ;;  %910 = vmatmul.mubr.bf16.gmra.mxu1 %v448_v8 }
  0xf7   :  { %v440_v12 = vmul.f32 %v884_v11, %v407_v6 }
  0xf8   :  { %v254_v13 = vpop.f32.mrf.mxu0 }
  0xf9   :  { %v438_v16 = vmul.f32 %v397_v61, %v254_v13  ;;  %v450_v21 = vpack.c.bf16 %v440_v12, %v439_v17 }
  0xfa   :  { %v887_v18 = vpop.f32.mrf.mxu0 }
  0xfb   :  { %v449_v20 = vpack.c.bf16 %v438_v16, %v437_v15  ;;  %v443_v30 = vmul.f32 %v887_v18, %v422_v27 }
  0xfc   :  { %v267_v22 = vpop.f32.mrf.mxu0 }
  0xfd   :  { %913 = vmatprep.mubr.bf16.mxu1 %v449_v20  ;;  %v441_v28 = vmul.f32 %v412_v19, %v267_v22 }
  0xfe   :  { %v888_v23 = vpop.f32.mrf.mxu0  ;;  %914 = vmatmul.mubr.bf16.gmra.mxu1 %v450_v21 }
  0xff   :  { %v444_v25 = vmul.f32 %v888_v23, %v427_v24 }
 0x100   :  { %v270_v26 = vpop.f32.mrf.mxu0 }
 0x101   :  { %v442_v29 = vmul.f32 %v417_v14, %v270_v26  ;;  %v452_v32 = vpack.c.bf16 %v444_v25, %v443_v30 }
 0x103   :  { %v451_v31 = vpack.c.bf16 %v442_v29, %v441_v28 }
 0x105   :  { %917 = vmatprep.mubr.bf16.mxu1 %v451_v31 }
 0x106   :  { %918 = vmatmul.mubr.bf16.gmra.mxu1 %v452_v32 }
 0x1ae   :  { %v907_v33 = vpop.f32.mrf.mxu1 }
 0x1af   :  { %v567_v36 = vadd.f32 %v907_v33, %v737_v34 }
 0x1b0   :  { %v558_v35 = vpop.f32.mrf.mxu1 }
 0x1b1   :  { %v559_v38 = vadd.f32 %v737_v34, %v558_v35  ;;  %v623_v41 = vmax.f32 %v567_v36, 0.0 }
 0x1b2   :  { %v908_v37 = vpop.f32.mrf.mxu1 }
 0x1b3   :  { %v570_v39 = vadd.f32 %v908_v37, %v737_v34  ;;  %v621_v45 = vmax.f32 %v559_v38, 0.0 }
 0x1b4   :  { %v561_v40 = vpop.f32.mrf.mxu1 }
 0x1b5   :  { %v624_v42 = vmax.f32 %v570_v39, 0.0  ;;  %v562_v43 = vadd.f32 %v737_v34, %v561_v40 }
 0x1b6   :  { %v911_v44 = vpop.f32.mrf.mxu1 }
 0x1b7   :  { %v786_v46 = vpack.c.bf16 %v624_v42, %v623_v41  ;;  %v622_v47 = vmax.f32 %v562_v43, 0.0  ;;  %v583_v50 = vadd.f32 %v911_v44, %v737_v34 }
 0x1b8   :  { %v574_v48 = vpop.f32.mrf.mxu1 }
 0x1b9   :  { %818 = vst [vmem:[%s1131_s5 + $0x8] sm:$0xff] %v786_v46   ;;  %v781_v49 = vpack.c.bf16 %v622_v47, %v621_v45  ;;  %v575_v52 = vadd.f32 %v737_v34, %v574_v48  ;;  %v627_v55 = vmax.f32 %v583_v50, 0.0 }
 0x1ba   :  { %v912_v51 = vpop.f32.mrf.mxu1 }
 0x1bb   :  { %782 = vst [vmem:[%s1131_s5] sm:$0xff] %v781_v49   ;;  %v586_v53 = vadd.f32 %v912_v51, %v737_v34  ;;  %v625_v59 = vmax.f32 %v575_v52, 0.0 }
 0x1bc   :  { %v577_v54 = vpop.f32.mrf.mxu1 }
 0x1bd   :  { %v628_v56 = vmax.f32 %v586_v53, 0.0  ;;  %v578_v57 = vadd.f32 %v737_v34, %v577_v54 }
 0x1be   :  { %v915_v58 = vpop.f32.mrf.mxu1 }
 0x1bf   :  { %v796_v60 = vpack.c.bf16 %v628_v56, %v627_v55  ;;  %v626_v61 = vmax.f32 %v578_v57, 0.0  ;;  %v599_v0 = vadd.f32 %v915_v58, %v737_v34 }
 0x1c0   :  { %v590_v62 = vpop.f32.mrf.mxu1 }
 0x1c1   :  { %820 = vst [vmem:[%s1131_s5 + $0x18] sm:$0xff] %v796_v60   ;;  %v791_v63 = vpack.c.bf16 %v626_v61, %v625_v59  ;;  %v591_v2 = vadd.f32 %v737_v34, %v590_v62  ;;  %v631_v5 = vmax.f32 %v599_v0, 0.0 }
 0x1c2   :  { %v916_v1 = vpop.f32.mrf.mxu1 }
 0x1c3   :  { %819 = vst [vmem:[%s1131_s5 + $0x10] sm:$0xff] %v791_v63   ;;  %v602_v3 = vadd.f32 %v916_v1, %v737_v34  ;;  %v629_v9 = vmax.f32 %v591_v2, 0.0 }
 0x1c4   :  { %v593_v4 = vpop.f32.mrf.mxu1 }
 0x1c5   :  { %v632_v6 = vmax.f32 %v602_v3, 0.0  ;;  %v594_v7 = vadd.f32 %v737_v34, %v593_v4 }
 0x1c6   :  { %v919_v8 = vpop.f32.mrf.mxu1 }
 0x1c7   :  { %v806_v10 = vpack.c.bf16 %v632_v6, %v631_v5  ;;  %v630_v11 = vmax.f32 %v594_v7, 0.0  ;;  %v615_v14 = vadd.f32 %v919_v8, %v737_v34 }
 0x1c8   :  { %v606_v12 = vpop.f32.mrf.mxu1 }
 0x1c9   :  { %822 = vst [vmem:[%s1131_s5 + $0x28] sm:$0xff] %v806_v10   ;;  %v801_v13 = vpack.c.bf16 %v630_v11, %v629_v9  ;;  %v607_v16 = vadd.f32 %v737_v34, %v606_v12  ;;  %v635_v19 = vmax.f32 %v615_v14, 0.0 }
 0x1ca   :  { %v920_v15 = vpop.f32.mrf.mxu1 }
 0x1cb   :  { %821 = vst [vmem:[%s1131_s5 + $0x20] sm:$0xff] %v801_v13   ;;  %v618_v17 = vadd.f32 %v920_v15, %v737_v34  ;;  %v633_v22 = vmax.f32 %v607_v16, 0.0 }
 0x1cc   :  { %v609_v18 = vpop.f32.mrf.mxu1 }
 0x1cd   :  { %v636_v20 = vmax.f32 %v618_v17, 0.0  ;;  %v610_v21 = vadd.f32 %v737_v34, %v609_v18 }
 0x1cf   :  { %v816_v23 = vpack.c.bf16 %v636_v20, %v635_v19  ;;  %v634_v24 = vmax.f32 %v610_v21, 0.0 }
 0x1d1   :  { %824 = vst [vmem:[%s1131_s5 + $0x38] sm:$0xff] %v816_v23   ;;  %v811_v25 = vpack.c.bf16 %v634_v24, %v633_v22 }
 0x1d3   :  { %823 = vst [vmem:[%s1131_s5 + $0x30] sm:$0xff] %v811_v25  }

// kernel: encoder_forward.3
= control target key start
LH: loop header
LB: loop body
LE: loop exit
PB: predicated region body
PF: predicated region fallthrough
CT: control target
= control target key end

     0   :  { %v805_v1 = vmov 0   ;;  %s1007_s1 = inlined_call_operand.vmem [shape: bf16[128,128], index: 1, kind: input, shape index: {}]   ;;  %s1008_s0 = inlined_call_operand.vmem [shape: bf16[128,128], index: 0, kind: input, shape index: {}]   ;;  %s1009_s2 = inlined_call_operand.vmem [shape: f32[128,1], index: 2, kind: input, shape index: {}]   ;;  %s1010_s3 = inlined_call_operand.vmem [shape: bf16[128,128], index: 3, kind: input, shape index: {}]   ;;  %s1011_s4 = inlined_call_operand.vmem [shape: f32[1,128], index: 4, kind: input, shape index: {}]   ;;  %s1012_s5 = inlined_call_operand.vmem [shape: f32[128,128], index: 5, kind: output, shape index: {}]  }
   0x1   :  { %v781_v0 = vld [vmem:[%s1007_s1 + $0x38] sm:$0xff]   ;;  %779 = vset.pattern.permute.xlu0 %v805_v1  ;;  %780 = vset.pattern.permute.xlu1 %v805_v1  ;;  %v782_v2 = vld [vmem:[%s1007_s1 + $0x30] sm:$0xff]   ;;  %v783_v3 = vld [vmem:[%s1007_s1 + $0x28] sm:$0xff]  }
   0x2   :  { %714 = vmatprep.subr.bf16.mxu0 %v781_v0  ;;  %v784_v4 = vld [vmem:[%s1007_s1 + $0x20] sm:$0xff]   ;;  %v785_v6 = vld [vmem:[%s1007_s1 + $0x18] sm:$0xff]   ;;  %v786_v7 = vld [vmem:[%s1007_s1 + $0x10] sm:$0xff]  }
   0x3   :  { %715 = vmatpush3.bf16.msra.mxu0 %v781_v0  ;;  %v789_v5 = vld [vmem:[%s1008_s0] sm:$0xff]   ;;  %v335_v9 = vld [vmem:[%s1009_s2 + $0x10] sm:$0xff]  ;;  %v334_v10 = vld [vmem:[%s1009_s2 + $0x8] sm:$0xff] }
   0x4   :  { %716 = vmatprep.subr.bf16.mxu0 %v782_v2  ;;  %730 = vmatprep.mubr.bf16.mxu0 %v789_v5  ;;  %v333_v8 = vld [vmem:[%s1009_s2] sm:$0xff]  ;;  %v336_v11 = vld [vmem:[%s1009_s2 + $0x18] sm:$0xff]  ;;  %v787_v12 = vld [vmem:[%s1007_s1 + $0x8] sm:$0xff]  }
   0x5   :  { %351 = vperm.xlu0 %779, %v333_v8   ;;  %361 = vperm.xlu1 %780, %v335_v9   ;;  %v337_v13 = vld [vmem:[%s1009_s2 + $0x20] sm:$0xff]  ;;  %v338_v14 = vld [vmem:[%s1009_s2 + $0x28] sm:$0xff]  ;;  %v797_v16 = vld [vmem:[%s1010_s3 + $0x38] sm:$0xff]  }
   0x6   :  { %v788_v15 = vld [vmem:[%s1007_s1] sm:$0xff]   ;;  %v798_v17 = vld [vmem:[%s1010_s3 + $0x30] sm:$0xff]   ;;  %v340_v19 = vld [vmem:[%s1009_s2 + $0x38] sm:$0xff]  ;;  %746 = vmatprep.subr.bf16.mxu1 %v797_v16 }
   0x7   :  { %717 = vmatpush3.bf16.msra.mxu0 %v782_v2  ;;  %v339_v18 = vld [vmem:[%s1009_s2 + $0x30] sm:$0xff]  ;;  %747 = vmatpush3.bf16.msra.mxu1 %v797_v16  ;;  %v799_v20 = vld [vmem:[%s1010_s3 + $0x28] sm:$0xff]   ;;  %v341_v22 = vld [vmem:[%s1009_s2 + $0x40] sm:$0xff] }
   0x8   :  { %718 = vmatprep.subr.bf16.mxu0 %v783_v3  ;;  %748 = vmatprep.subr.bf16.mxu1 %v798_v17  ;;  %v790_v21 = vld [vmem:[%s1008_s0 + $0x8] sm:$0xff]   ;;  %v791_v24 = vld [vmem:[%s1008_s0 + $0x10] sm:$0xff]   ;;  %v800_v25 = vld [vmem:[%s1010_s3 + $0x20] sm:$0xff]  }
   0x9   :  { %356 = vperm.xlu0 %779, %v334_v10   ;;  %366 = vperm.xlu1 %780, %v336_v11   ;;  %v342_v23 = vld [vmem:[%s1009_s2 + $0x48] sm:$0xff]  ;;  %v343_v26 = vld [vmem:[%s1009_s2 + $0x50] sm:$0xff]  ;;  %v344_v27 = vld [vmem:[%s1009_s2 + $0x58] sm:$0xff] }
   0xa   :  { %v801_v28 = vld [vmem:[%s1010_s3 + $0x18] sm:$0xff]   ;;  %v345_v30 = vld [vmem:[%s1009_s2 + $0x60] sm:$0xff]  ;;  %v346_v31 = vld [vmem:[%s1009_s2 + $0x68] sm:$0xff] }
   0xb   :  { %719 = vmatpush3.bf16.msra.mxu0 %v783_v3  ;;  %749 = vmatpush3.bf16.msra.mxu1 %v798_v17  ;;  %v792_v29 = vld [vmem:[%s1008_s0 + $0x18] sm:$0xff]   ;;  %v793_v32 = vld [vmem:[%s1008_s0 + $0x20] sm:$0xff]   ;;  %v347_v33 = vld [vmem:[%s1009_s2 + $0x70] sm:$0xff] }
   0xc   :  { %720 = vmatprep.subr.bf16.mxu0 %v784_v4  ;;  %750 = vmatprep.subr.bf16.mxu1 %v799_v20  ;;  %v348_v34 = vld [vmem:[%s1009_s2 + $0x78] sm:$0xff]  ;;  %v794_v35 = vld [vmem:[%s1008_s0 + $0x28] sm:$0xff]   ;;  %v795_v36 = vld [vmem:[%s1008_s0 + $0x30] sm:$0xff]  }
   0xd   :  { %371 = vperm.xlu0 %779, %v337_v13   ;;  %376 = vperm.xlu1 %780, %v338_v14   ;;  %v796_v37 = vld [vmem:[%s1008_s0 + $0x38] sm:$0xff]   ;;  %v802_v38 = vld [vmem:[%s1010_s3 + $0x10] sm:$0xff]   ;;  %v803_v39 = vld [vmem:[%s1010_s3 + $0x8] sm:$0xff]  }
   0xe   :  { %v804_v40 = vld [vmem:[%s1010_s3] sm:$0xff]  }
   0xf   :  { %721 = vmatpush3.bf16.msra.mxu0 %v784_v4  ;;  %751 = vmatpush3.bf16.msra.mxu1 %v799_v20 }
  0x10   :  { %722 = vmatprep.subr.bf16.mxu0 %v785_v6  ;;  %752 = vmatprep.subr.bf16.mxu1 %v800_v25 }
  0x11   :  { %381 = vperm.xlu0 %779, %v339_v18   ;;  %386 = vperm.xlu1 %780, %v340_v19  }
  0x13   :  { %723 = vmatpush3.bf16.msra.mxu0 %v785_v6  ;;  %753 = vmatpush3.bf16.msra.mxu1 %v800_v25 }
  0x14   :  { %724 = vmatprep.subr.bf16.mxu0 %v786_v7  ;;  %754 = vmatprep.subr.bf16.mxu1 %v801_v28 }
  0x15   :  { %391 = vperm.xlu0 %779, %v341_v22   ;;  %396 = vperm.xlu1 %780, %v342_v23  }
  0x17   :  { %725 = vmatpush3.bf16.msra.mxu0 %v786_v7  ;;  %755 = vmatpush3.bf16.msra.mxu1 %v801_v28 }
  0x18   :  { %726 = vmatprep.subr.bf16.mxu0 %v787_v12  ;;  %756 = vmatprep.subr.bf16.mxu1 %v802_v38 }
  0x19   :  { %401 = vperm.xlu0 %779, %v343_v26   ;;  %406 = vperm.xlu1 %780, %v344_v27  }
  0x1b   :  { %727 = vmatpush3.bf16.msra.mxu0 %v787_v12  ;;  %757 = vmatpush3.bf16.msra.mxu1 %v802_v38 }
  0x1c   :  { %728 = vmatprep.subr.bf16.mxu0 %v788_v15  ;;  %758 = vmatprep.subr.bf16.mxu1 %v803_v39 }
  0x1d   :  { %411 = vperm.xlu0 %779, %v345_v30   ;;  %416 = vperm.xlu1 %780, %v346_v31  }
  0x1f   :  { %729 = vmatpush3.bf16.msra.mxu0 %v788_v15  ;;  %759 = vmatpush3.bf16.msra.mxu1 %v803_v39 }
  0x20   :  { %760 = vmatprep.subr.bf16.mxu1 %v804_v40 }
  0x21   :  { %421 = vperm.xlu0 %779, %v347_v33   ;;  %426 = vperm.xlu1 %780, %v348_v34   ;;  %v673_v33 = vld [vmem:[%s1011_s4] ss:$0 sm:$0xff] }
  0x22   :  { %731 = vmatmul.mubr.bf16.vlgmr.msra.gmra.mxu0 %v790_v21 }
  0x23   :  { %734 = vmatprep.mubr.bf16.mxu0 %v791_v24  ;;  %761 = vmatpush3.bf16.msra.mxu1 %v804_v40 }
  0x2a   :  { %735 = vmatmul.mubr.bf16.gmra.mxu0 %v792_v29 }
  0x2b   :  { %738 = vmatprep.mubr.bf16.mxu0 %v793_v32 }
  0x32   :  { %739 = vmatmul.mubr.bf16.gmra.mxu0 %v794_v35 }
  0x33   :  { %742 = vmatprep.mubr.bf16.mxu0 %v795_v36 }
  0x3a   :  { %743 = vmatmul.mubr.bf16.gmra.mxu0 %v796_v37 }
  0x80   :  { %v362_v41 = vpop.permute.xlu1 %361  ;;  %v352_v42 = vpop.permute.xlu0 %351 }
  0x84   :  { %v367_v43 = vpop.permute.xlu1 %366  ;;  %v357_v44 = vpop.permute.xlu0 %356 }
  0x88   :  { %v377_v45 = vpop.permute.xlu1 %376  ;;  %v372_v47 = vpop.permute.xlu0 %371 }
  0x8c   :  { %v387_v50 = vpop.permute.xlu1 %386  ;;  %v382_v53 = vpop.permute.xlu0 %381 }
  0x90   :  { %v397_v61 = vpop.permute.xlu1 %396  ;;  %v392_v63 = vpop.permute.xlu0 %391 }
  0x94   :  { %v407_v6 = vpop.permute.xlu1 %406  ;;  %v402_v10 = vpop.permute.xlu0 %401 }
  0x98   :  { %v417_v14 = vpop.permute.xlu1 %416  ;;  %v412_v19 = vpop.permute.xlu0 %411 }
  0x9c   :  { %v427_v24 = vpop.permute.xlu1 %426  ;;  %v422_v27 = vpop.permute.xlu0 %421 }
  0xe2   :  { %v732_v46 = vpop.f32.mrf.mxu0 }
  0xe3   :  { %v431_v56 = vmul.f32 %v732_v46, %v362_v41 }
  0xe4   :  { %v219_v48 = vpop.f32.mrf.mxu0 }
  0xe5   :  { %v429_v54 = vmul.f32 %v352_v42, %v219_v48 }
  0xe6   :  { %v733_v49 = vpop.f32.mrf.mxu0 }
  0xe7   :  { %v432_v51 = vmul.f32 %v733_v49, %v367_v43 }
  0xe8   :  { %v222_v52 = vpop.f32.mrf.mxu0 }
  0xe9   :  { %v430_v55 = vmul.f32 %v357_v44, %v222_v52  ;;  %v446_v59 = vpack.c.bf16 %v432_v51, %v431_v56 }
  0xea   :  { %v736_v57 = vpop.f32.mrf.mxu0 }
  0xeb   :  { %v445_v58 = vpack.c.bf16 %v430_v55, %v429_v54  ;;  %v435_v4 = vmul.f32 %v736_v57, %v382_v53 }
  0xec   :  { %v235_v60 = vpop.f32.mrf.mxu0 }
  0xed   :  { %762 = vmatprep.mubr.bf16.mxu1 %v445_v58  ;;  %v433_v2 = vmul.f32 %v372_v47, %v235_v60 }
  0xee   :  { %v737_v62 = vpop.f32.mrf.mxu0  ;;  %763 = vmatmul.mubr.bf16.vlgmr.msra.gmra.mxu1 %v446_v59 }
  0xef   :  { %v436_v0 = vmul.f32 %v737_v62, %v387_v50 }
  0xf0   :  { %v238_v1 = vpop.f32.mrf.mxu0 }
  0xf1   :  { %v434_v3 = vmul.f32 %v377_v45, %v238_v1  ;;  %v448_v8 = vpack.c.bf16 %v436_v0, %v435_v4 }
  0xf2   :  { %v740_v5 = vpop.f32.mrf.mxu0 }
  0xf3   :  { %v447_v7 = vpack.c.bf16 %v434_v3, %v433_v2  ;;  %v439_v17 = vmul.f32 %v740_v5, %v402_v10 }
  0xf4   :  { %v251_v9 = vpop.f32.mrf.mxu0 }
  0xf5   :  { %766 = vmatprep.mubr.bf16.mxu1 %v447_v7  ;;  %v437_v15 = vmul.f32 %v392_v63, %v251_v9 }
  0xf6   :  { %v741_v11 = vpop.f32.mrf.mxu0  ;;  %767 = vmatmul.mubr.bf16.gmra.mxu1 %v448_v8 }
  0xf7   :  { %v440_v12 = vmul.f32 %v741_v11, %v407_v6 }
  0xf8   :  { %v254_v13 = vpop.f32.mrf.mxu0 }
  0xf9   :  { %v438_v16 = vmul.f32 %v397_v61, %v254_v13  ;;  %v450_v21 = vpack.c.bf16 %v440_v12, %v439_v17 }
  0xfa   :  { %v744_v18 = vpop.f32.mrf.mxu0 }
  0xfb   :  { %v449_v20 = vpack.c.bf16 %v438_v16, %v437_v15  ;;  %v443_v30 = vmul.f32 %v744_v18, %v422_v27 }
  0xfc   :  { %v267_v22 = vpop.f32.mrf.mxu0 }
  0xfd   :  { %770 = vmatprep.mubr.bf16.mxu1 %v449_v20  ;;  %v441_v28 = vmul.f32 %v412_v19, %v267_v22 }
  0xfe   :  { %v745_v23 = vpop.f32.mrf.mxu0  ;;  %771 = vmatmul.mubr.bf16.gmra.mxu1 %v450_v21 }
  0xff   :  { %v444_v25 = vmul.f32 %v745_v23, %v427_v24 }
 0x100   :  { %v270_v26 = vpop.f32.mrf.mxu0 }
 0x101   :  { %v442_v29 = vmul.f32 %v417_v14, %v270_v26  ;;  %v452_v32 = vpack.c.bf16 %v444_v25, %v443_v30 }
 0x103   :  { %v451_v31 = vpack.c.bf16 %v442_v29, %v441_v28 }
 0x105   :  { %774 = vmatprep.mubr.bf16.mxu1 %v451_v31 }
 0x106   :  { %775 = vmatmul.mubr.bf16.gmra.mxu1 %v452_v32 }
 0x1ae   :  { %v764_v34 = vpop.f32.mrf.mxu1 }
 0x1af   :  { %v567_v35 = vadd.f32 %v764_v34, %v673_v33 }
 0x1b0   :  { %v558_v36 = vpop.f32.mrf.mxu1 }
 0x1b1   :  { %v623_v37 = vmax.f32 %v567_v35, 0.0  ;;  %v559_v38 = vadd.f32 %v673_v33, %v558_v36 }
 0x1b2   :  { %v765_v39 = vpop.f32.mrf.mxu1 }
 0x1b3   :  { %639 = vst [vmem:[%s1012_s5 + $0x10] sm:$0xff] %v623_v37  ;;  %v621_v40 = vmax.f32 %v559_v38, 0.0  ;;  %v570_v41 = vadd.f32 %v765_v39, %v673_v33 }
 0x1b4   :  { %v561_v42 = vpop.f32.mrf.mxu1 }
 0x1b5   :  { %637 = vst [vmem:[%s1012_s5] sm:$0xff] %v621_v40  ;;  %v624_v43 = vmax.f32 %v570_v41, 0.0  ;;  %v562_v44 = vadd.f32 %v673_v33, %v561_v42 }
 0x1b6   :  { %v768_v45 = vpop.f32.mrf.mxu1 }
 0x1b7   :  { %640 = vst [vmem:[%s1012_s5 + $0x18] sm:$0xff] %v624_v43  ;;  %v622_v46 = vmax.f32 %v562_v44, 0.0  ;;  %v583_v47 = vadd.f32 %v768_v45, %v673_v33 }
 0x1b8   :  { %v574_v48 = vpop.f32.mrf.mxu1 }
 0x1b9   :  { %638 = vst [vmem:[%s1012_s5 + $0x8] sm:$0xff] %v622_v46  ;;  %v627_v49 = vmax.f32 %v583_v47, 0.0  ;;  %v575_v50 = vadd.f32 %v673_v33, %v574_v48 }
 0x1ba   :  { %v769_v51 = vpop.f32.mrf.mxu1 }
 0x1bb   :  { %643 = vst [vmem:[%s1012_s5 + $0x30] sm:$0xff] %v627_v49  ;;  %v625_v52 = vmax.f32 %v575_v50, 0.0  ;;  %v586_v53 = vadd.f32 %v769_v51, %v673_v33 }
 0x1bc   :  { %v577_v54 = vpop.f32.mrf.mxu1 }
 0x1bd   :  { %641 = vst [vmem:[%s1012_s5 + $0x20] sm:$0xff] %v625_v52  ;;  %v628_v55 = vmax.f32 %v586_v53, 0.0  ;;  %v578_v56 = vadd.f32 %v673_v33, %v577_v54 }
 0x1be   :  { %v772_v57 = vpop.f32.mrf.mxu1 }
 0x1bf   :  { %644 = vst [vmem:[%s1012_s5 + $0x38] sm:$0xff] %v628_v55  ;;  %v626_v58 = vmax.f32 %v578_v56, 0.0  ;;  %v599_v59 = vadd.f32 %v772_v57, %v673_v33 }
 0x1c0   :  { %v590_v60 = vpop.f32.mrf.mxu1 }
 0x1c1   :  { %642 = vst [vmem:[%s1012_s5 + $0x28] sm:$0xff] %v626_v58  ;;  %v631_v61 = vmax.f32 %v599_v59, 0.0  ;;  %v591_v62 = vadd.f32 %v673_v33, %v590_v60 }
 0x1c2   :  { %v773_v63 = vpop.f32.mrf.mxu1 }
 0x1c3   :  { %647 = vst [vmem:[%s1012_s5 + $0x50] sm:$0xff] %v631_v61  ;;  %v629_v0 = vmax.f32 %v591_v62, 0.0  ;;  %v602_v1 = vadd.f32 %v773_v63, %v673_v33 }
 0x1c4   :  { %v593_v2 = vpop.f32.mrf.mxu1 }
 0x1c5   :  { %645 = vst [vmem:[%s1012_s5 + $0x40] sm:$0xff] %v629_v0  ;;  %v632_v3 = vmax.f32 %v602_v1, 0.0  ;;  %v594_v4 = vadd.f32 %v673_v33, %v593_v2 }
 0x1c6   :  { %v776_v5 = vpop.f32.mrf.mxu1 }
 0x1c7   :  { %648 = vst [vmem:[%s1012_s5 + $0x58] sm:$0xff] %v632_v3  ;;  %v630_v6 = vmax.f32 %v594_v4, 0.0  ;;  %v615_v7 = vadd.f32 %v776_v5, %v673_v33 }
 0x1c8   :  { %v606_v8 = vpop.f32.mrf.mxu1 }
 0x1c9   :  { %646 = vst [vmem:[%s1012_s5 + $0x48] sm:$0xff] %v630_v6  ;;  %v635_v9 = vmax.f32 %v615_v7, 0.0  ;;  %v607_v10 = vadd.f32 %v673_v33, %v606_v8 }
 0x1ca   :  { %v777_v11 = vpop.f32.mrf.mxu1 }
 0x1cb   :  { %651 = vst [vmem:[%s1012_s5 + $0x70] sm:$0xff] %v635_v9  ;;  %v633_v12 = vmax.f32 %v607_v10, 0.0  ;;  %v618_v13 = vadd.f32 %v777_v11, %v673_v33 }
 0x1cc   :  { %v609_v14 = vpop.f32.mrf.mxu1 }
 0x1cd   :  { %649 = vst [vmem:[%s1012_s5 + $0x60] sm:$0xff] %v633_v12  ;;  %v636_v15 = vmax.f32 %v618_v13, 0.0  ;;  %v610_v16 = vadd.f32 %v673_v33, %v609_v14 }
 0x1cf   :  { %652 = vst [vmem:[%s1012_s5 + $0x78] sm:$0xff] %v636_v15  ;;  %v634_v17 = vmax.f32 %v610_v16, 0.0 }
 0x1d1   :  { %650 = vst [vmem:[%s1012_s5 + $0x68] sm:$0xff] %v634_v17 }

</bundles_post_ra>
